<compile_context>
chip_gen: v7x
topology: tpu7x:2x2x1
jax: 0.10.0
libtpu: 0.0.40
codegen_flags: <defaults>
</compile_context>

<pallas_src>
import functools

import jax
import jax.numpy as jnp
from jax import lax
from jax.experimental import pallas as pl
from jax.experimental.pallas import tpu as pltpu


def _round_up(x, m):
    return -(-x // m) * m


# ---------------------------------------------------------------------------
# Kernels
# ---------------------------------------------------------------------------

def _global_pool_kernel(x_ref, o_ref, *, inv):
    """Global average pool.

    x_ref: (tc, HW) native dtype, spatial dims flattened onto the lane axis.
    o_ref: (1, tc)  lane-dense output (or (tc, 1) fallback for huge images).
    """
    s = jnp.sum(x_ref[...], axis=1, dtype=jnp.float32)          # f32 accumulate
    o_ref[...] = (s * inv).astype(o_ref.dtype).reshape(o_ref.shape)


def _window_pool_kernel(x_ref, o_ref, *, h, w):
    """Non-overlapping (h, w) window mean with the batch folded into M.

    x_ref: (tc*Hp, Wp) — tc images stacked along the sublane axis, native dtype.
    o_ref: (tc*Ho, Wo)
    """
    rows_out, wo = o_ref.shape
    _, wp = x_ref.shape
    inv = 1.0 / float(h * w)

    # Row pooling: h strided sublane reads straight from the VMEM block,
    # accumulated in f32 on the VPU.  The f32 temp is h x smaller than the
    # input block (no whole-block upcast).
    acc = x_ref[pl.ds(0, rows_out, stride=h), :].astype(jnp.float32)
    for r in range(1, h):
        acc = acc + x_ref[pl.ds(r, rows_out, stride=h), :].astype(jnp.float32)

    if w == 1:
        y = acc
    else:
        # Column pooling as ONE large-M MXU matmul against a 0/1 pooling
        # matrix built from 2-D iotas (no in-kernel reshapes, no broadcasts).
        j = lax.broadcasted_iota(jnp.int32, (wp, wo), 0)
        v = lax.broadcasted_iota(jnp.int32, (wp, wo), 1)
        p = ((j >= v * w) & (j < (v + 1) * w)).astype(jnp.float32)   # (Wp, Wo)
        y = jnp.dot(acc, p, preferred_element_type=jnp.float32)      # (rows_out, Wo)

    o_ref[...] = (y * inv).astype(o_ref.dtype)


# ---------------------------------------------------------------------------
# Tile sizing
# ---------------------------------------------------------------------------

def _vmem_targets():
    """(target streamed bytes per grid step, vmem_limit_bytes) per generation."""
    try:
        vmem = pltpu.get_tpu_info().vmem_capacity_bytes
    except Exception:
        vmem = 64 * 1024 * 1024                     # conservative (v7x-sized)
    if vmem >= 96 * 1024 * 1024:                    # v5e / v6e: 128 MiB VMEM
        return 8 * 1024 * 1024, 64 * 1024 * 1024
    return 4 * 1024 * 1024, 32 * 1024 * 1024        # v7x: 64 MiB VMEM


def _rows_per_step(nc, real_bytes_per_row, vmem_bytes_per_row):
    """How many N*C rows per grid step: sized by real streamed HBM bytes,
    capped by the full double-buffered VMEM footprint (<= half the limit)."""
    target_stream, vmem_limit = _vmem_targets()
    budget = vmem_limit // 2
    tc = min(max(1, target_stream // max(1, real_bytes_per_row)),
             max(1, budget // max(1, vmem_bytes_per_row)))
    return min(int(tc), nc), int(vmem_limit)


# ---------------------------------------------------------------------------
# pallas_call wrappers
# ---------------------------------------------------------------------------

def _global_mean(x2):
    """x2: (nc, HW) -> (nc,) per-row mean (f32 accumulation, native out dtype)."""
    nc, hw = x2.shape
    itemsize = x2.dtype.itemsize
    hw_pad = _round_up(hw, 128)
    real_row = hw * itemsize
    # 2x input buffers + one f32 reduce temp + (tiny) output buffers.
    vmem_row = hw_pad * itemsize * 2 + hw_pad * 4 + 128
    tc, vmem_limit = _rows_per_step(nc, real_row, vmem_row)

    # Block legality ((8,128) rule) + lane-dense output when possible.
    if tc >= nc:
        tc, lane_dense = nc, True
    elif tc >= 128:
        tc, lane_dense = (tc // 128) * 128, True
    else:
        # Huge single images: (nc, 1) output fallback (tiny, masked stores).
        tc, lane_dense = max(8, (tc // 8) * 8), False
        if tc >= nc:
            tc = nc

    grid = (pl.cdiv(nc, tc),)
    kern = functools.partial(_global_pool_kernel, inv=1.0 / float(hw))
    cp = pltpu.CompilerParams(dimension_semantics=("parallel",),
                              vmem_limit_bytes=vmem_limit)
    in_spec = pl.BlockSpec((tc, hw), lambda i: (i, 0))

    if lane_dense:
        out = pl.pallas_call(
            kern,
            out_shape=jax.ShapeDtypeStruct((1, nc), x2.dtype),
            grid=grid,
            in_specs=[in_spec],
            out_specs=pl.BlockSpec((1, tc), lambda i: (0, i)),
            compiler_params=cp,
        )(x2)
    else:
        out = pl.pallas_call(
            kern,
            out_shape=jax.ShapeDtypeStruct((nc, 1), x2.dtype),
            grid=grid,
            in_specs=[in_spec],
            out_specs=pl.BlockSpec((tc, 1), lambda i: (i, 0)),
            compiler_params=cp,
        )(x2)
    return out.reshape(nc)


def _window_mean(x2, nc, hp, wp, ho, wo, h, w):
    """x2: (nc*hp, wp) -> (nc*ho, wo), mean over non-overlapping (h, w) windows."""
    itemsize = x2.dtype.itemsize
    wp_pad = _round_up(wp, 128)
    wo_pad = _round_up(wo, 128)
    real_row = hp * wp * itemsize
    vmem_row = (hp * wp_pad * itemsize * 2           # 2x input buffers
                + ho * wp_pad * 4 * 2                # f32 row-pool acc + read temp
                + ho * wo_pad * (4 + 2 * itemsize))  # matmul result + 2x output buffers
    tc, vmem_limit = _rows_per_step(nc, real_row, vmem_row)

    if tc >= nc:
        tc = nc
    else:
        tc = max(8, (tc // 8) * 8)                   # keep tc*hp / tc*ho sublane-legal
        if tc >= nc:
            tc = nc

    grid = (pl.cdiv(nc, tc),)
    kern = functools.partial(_window_pool_kernel, h=h, w=w)
    out = pl.pallas_call(
        kern,
        out_shape=jax.ShapeDtypeStruct((nc * ho, wo), x2.dtype),
        grid=grid,
        in_specs=[pl.BlockSpec((tc * hp, wp), lambda i: (i, 0))],
        out_specs=pl.BlockSpec((tc * ho, wo), lambda i: (i, 0)),
        compiler_params=pltpu.CompilerParams(
            dimension_semantics=("parallel",),
            vmem_limit_bytes=vmem_limit),
    )(x2)
    return out


# ---------------------------------------------------------------------------
# Public API (AdaAvgPool.forward equivalent)
# ---------------------------------------------------------------------------

def ada_avg_pool(x, size=0):
    """JAX/Pallas equivalent of AdaAvgPool.forward.  x is NCHW."""
    if size == -1:
        return x
    N, C, H, W = x.shape
    if size == 0:
        assert H == W, "AdaAvgPool(size=0) requires square spatial dims"
        h, w = H, W
    elif size >= 1:
        h, w = size, size
    else:
        raise NotImplementedError("check the avg kernel size !")
    if not jnp.issubdtype(x.dtype, jnp.floating):
        raise TypeError("ada_avg_pool expects a floating-point input")

    Ho, Wo = H // h, W // w
    if Ho < 1 or Wo < 1:
        raise ValueError("pooling kernel larger than the input")

    # F.avg_pool2d default stride=kernel, ceil_mode=False: drop the remainder.
    Hc, Wc = Ho * h, Wo * w
    if Hc != H or Wc != W:
        x = x[:, :, :Hc, :Wc]

    nc = N * C
    if Ho == 1 and Wo == 1:
        # Global pool (size=0, or size == cropped spatial extent): flatten the
        # spatial dims (free, contiguous) so the image is lane-dense.
        x2 = x.reshape(nc, Hc * Wc)
        out = _global_mean(x2)                           # (nc,)
        return out.reshape(N, C, 1, 1)

    # Windowed pooling: free leading-dim merge, batch folded into M.
    x2 = x.reshape(nc * Hc, Wc)
    out = _window_mean(x2, nc, Hc, Wc, Ho, Wo, h, w)     # (nc*Ho, Wo)
    return out.reshape(N, C, Ho, Wo)


# ---------------------------------------------------------------------------
# Self-test
# ---------------------------------------------------------------------------

if __name__ == "__main__":
    key = jax.random.PRNGKey(0)
    x = jax.random.normal(key, (2, 4, 16, 16), dtype=jnp.float32)

    # size=0 (module default): global average pool -> (2, 4, 1, 1)
    y0 = jax.block_until_ready(ada_avg_pool(x, size=0))
    ref0 = jnp.mean(x, axis=(2, 3), keepdims=True)
    assert y0.shape == (2, 4, 1, 1)
    assert jnp.allclose(y0, ref0, atol=1e-5, rtol=1e-5)

    # size=4: non-overlapping 4x4 average pooling -> (2, 4, 4, 4)
    y4 = jax.block_until_ready(ada_avg_pool(x, size=4))
    ref4 = jnp.mean(x.reshape(2, 4, 4, 4, 4, 4), axis=(3, 5))
    assert y4.shape == (2, 4, 4, 4)
    assert jnp.allclose(y4, ref4, atol=1e-5, rtol=1e-5)

    # size=3: non-divisible case, trailing remainder dropped -> (2, 4, 5, 5)
    y3 = jax.block_until_ready(ada_avg_pool(x, size=3))
    ref3 = jnp.mean(x[:, :, :15, :15].reshape(2, 4, 5, 3, 5, 3), axis=(3, 5))
    assert y3.shape == (2, 4, 5, 5)
    assert jnp.allclose(y3, ref3, atol=1e-5, rtol=1e-5)

    # size == H: windowed request that degenerates to the global pool path.
    y16 = jax.block_until_ready(ada_avg_pool(x, size=16))
    assert y16.shape == (2, 4, 1, 1)
    assert jnp.allclose(y16, ref0, atol=1e-5, rtol=1e-5)

    # size=-1: identity
    y_id = jax.block_until_ready(ada_avg_pool(x, size=-1))
    assert y_id.shape == x.shape and jnp.allclose(y_id, x)

    # bf16 stays bf16 through the DMA; f32 accumulation inside the kernel.
    xb = x.astype(jnp.bfloat16)
    yb = jax.block_until_ready(ada_avg_pool(xb, size=4))
    refb = jnp.mean(xb.astype(jnp.float32).reshape(2, 4, 4, 4, 4, 4),
                    axis=(3, 5)).astype(jnp.bfloat16)
    assert yb.dtype == jnp.bfloat16
    assert jnp.allclose(yb.astype(jnp.float32), refb.astype(jnp.float32), atol=2e-2)

    yb0 = jax.block_until_ready(ada_avg_pool(xb, size=0))
    refb0 = jnp.mean(xb.astype(jnp.float32), axis=(2, 3),
                     keepdims=True).astype(jnp.bfloat16)
    assert yb0.dtype == jnp.bfloat16
    assert jnp.allclose(yb0.astype(jnp.float32), refb0.astype(jnp.float32), atol=2e-2)

    print("KERNEL_OK")
</pallas_src>

<mosaic_0001>
module attributes {stable_mosaic.version = 11 : i64} {
  func.func @_global_pool_kernel(%arg0: i32, %arg1: memref<8x256xf32, #tpu.memory_space<vmem>>, %arg2: memref<1x8xf32, #tpu.memory_space<vmem>>) attributes {dimension_semantics = [#tpu.dimension_semantics<parallel>], iteration_bounds = array<i64: 1>, scalar_prefetch = 0 : i64, scratch_operands = 0 : i64, tpu.core_type = #tpu.core_type<tc>, window_params = [{transform_indices = @transform_0, window_bounds = array<i64: 8, 256>}, {transform_indices = @transform_1, window_bounds = array<i64: 1, 8>}]} {
    %c0 = arith.constant 0 : index
    %c0_0 = arith.constant 0 : index
    %0 = vector.load %arg1[%c0, %c0_0] : memref<8x256xf32, #tpu.memory_space<vmem>>, vector<8x256xf32>
    %cst = arith.constant dense<0.000000e+00> : vector<8xf32>
    %1 = vector.multi_reduction <add>, %0, %cst [1] : vector<8x256xf32> to vector<8xf32>
    %cst_1 = arith.constant 3.906250e-03 : f32
    %2 = vector.broadcast %cst_1 : f32 to vector<8xf32>
    %3 = arith.mulf %1, %2 : vector<8xf32>
    %4 = vector.shape_cast %3 : vector<8xf32> to vector<1x8xf32>
    %c0_2 = arith.constant 0 : index
    %c0_3 = arith.constant 0 : index
    %5 = vector.load %arg2[%c0_2, %c0_3] : memref<1x8xf32, #tpu.memory_space<vmem>>, vector<1x8xf32>
    tpu.vector_store %arg2[%c0_2, %c0_3], %4 {strides = array<i32>} : memref<1x8xf32, #tpu.memory_space<vmem>>, vector<1x8xf32>,
    return
  }
  func.func @transform_0(%arg0: i32) -> (i32, i32) {
    %c0_i32 = arith.constant 0 : i32
    %c0_i32_0 = arith.constant 0 : i32
    return %arg0, %c0_i32 : i32, i32
  }
  func.func @transform_1(%arg0: i32) -> (i32, i32) {
    %c0_i32 = arith.constant 0 : i32
    %c0_i32_0 = arith.constant 0 : i32
    return %c0_i32, %arg0 : i32, i32
  }
}

</mosaic_0001>

<bundles_post_ra>
// kernel: tpu_custom_call.1
= control target key start
LH: loop header
LB: loop body
LE: loop exit
PB: predicated region body
PF: predicated region fallthrough
CT: control target
= control target key end

     0   :  { %6 = vsyncpa [#allocation3], 0  ;;  %s138_s0 = inlined_call_operand.hbm [shape: f32[8,256], index: 0, kind: input, shape index: {}]   ;;  %s139_s1 = inlined_call_operand.hbm [shape: f32[1,8], index: 1, kind: output, shape index: {}]  }
   0x1   :  { %7 = vsyncpa [#allocation4], 0  ;;  %s102_s6 = smov [#allocation2]   ;;  %s54_s10 = scalar_lea.hbm %s138_s0, 256 }
   0x2   :  { %s14_s7 = sshll.u32 %s102_s6, 4  ;;  %p55_p0 = scmp.ne.s32.totalorder %s138_s0, %s54_s10  ;;  %s15_s7 = int_to_ptr.vmem [resolvable:$true] %s14_s7 }
   0x3   :  { %p58_p1 = scmp.lt.u32.totalorder %s54_s10, %s138_s0 }
   0x5   :  { %p60_p2 = pnand %p58_p1, %p55_p0 }
   0x7   :  { %63 = shalt.err (!%p60_p2)
}
   0x8   :  { %s64_s15 = scalar_lea.vmem %s15_s7, 256  ;;  %p69_p4 = scmp.lt.s32.totalorder %s15_s7, %s15_s7 }
   0x9   :  { %p65_p3 = scmp.ne.s32.totalorder %s15_s7, %s64_s15  ;;  %p70_p5 = scmp.lt.s32.totalorder %s64_s15, %s64_s15 }
   0xb   :  { %p71_p6 = por %p70_p5, %p69_p4 }
   0xd   :  { %p72_p7 = pnand %p71_p6, %p65_p3 }
   0xf   :  { %75 = shalt.err (!%p72_p7)
}
  0x10   :  { %17 = dma.hbm_to_vmem [thread:$0]  %s138_s0, 256, %s15_s7, [#allocation3]  }
  0x11   :  { %98 = dma.done.wait [#allocation3], 256  }
  0x12   :  { %99 = vsyncadd [#allocation3], 4294967040  ;;  %v21_v0 = vld [vmem:[#allocation2] sm:$0xff]  ;;  %v22_v1 = vld [vmem:[#allocation2 + $0x8] sm:$0xff]  ;;  %v28_v3 = vlaneseq  ;;  %s103_s18 = smov [#allocation5]   ;;  %vm35_vm0 = vcmask 57344  }
  0x13   :  { %v23_v2 = vadd.f32 %v22_v1, %v21_v0  ;;  %s43_s19 = sshll.u32 %s103_s18, 4  ;;  %s44_s19 = int_to_ptr.vmem [resolvable:$true] %s43_s19 }
  0x14   :  { %v29_v4 = vand.u32 127, %v28_v3  ;;  %v31_v5 = vshrl.u32 %v28_v3, 7  ;;  %s76_s20 = scalar_lea.vmem %s44_s19, 16  ;;  %s80_s0 = scalar_lea.vmem %s44_s19, 32 }
  0x15   :  { %24 = vadd.xlane.f32.xlu0 %v23_v2  ;;  %p77_p8 = scmp.ne.s32.totalorder %s44_s19, %s76_s20  ;;  %p81_p9 = scmp.lt.s32.totalorder %s44_s19, %s44_s19 }
  0x16   :  { %v32_v6 = vsub.s32 %v29_v4, %v31_v5  ;;  %p82_p10 = scmp.lt.s32.totalorder %s80_s0, %s76_s20 }
  0x18   :  { %p83_p11 = por %p82_p10, %p81_p9 }
  0x1a   :  { %p84_p12 = pnand %p83_p11, %p77_p8 }
  0xa2   :  { %v25_v7 = vpop.xlane.xlu0 %24 }
  0xa3   :  { %v26_v8 = vmul.f32 0.00390625, %v25_v7 }
  0xa5   :  { %v33_v9 = vrot.slane %v26_v8, %v32_v6 }
  0xa7   :  { %36 = vst.msk [vmem:[#allocation5] sm:$0x1] %vm35_vm0, %v33_v9 }
  0xa8   :  { %87 = shalt.err (!%p84_p12)
}
  0xa9   :  { %s88_s23 = scalar_lea.hbm %s139_s1, 16 }
  0xaa   :  { %p89_p13 = scmp.ne.s32.totalorder %s139_s1, %s88_s23  ;;  %p92_p0 = scmp.lt.u32.totalorder %s88_s23, %s139_s1 }
  0xac   :  { %p94_p1 = pnand %p92_p0, %p89_p13 }
  0xae   :  { %97 = shalt.err (!%p94_p1)
}
  0xaf   :  { %46 = dma.vmem_to_hbm [thread:$0]  %s44_s19, 16, %s139_s1, [#allocation4]  }
  0xb0   :  { %100 = dma.done.wait [#allocation4], 16  }
  0xb1   :  { %101 = vsyncadd [#allocation4], 4294967280 }
  0xb2   :  { %50 = vsyncpa [#allocation3], 1 }
  0xb3   :  { %51 = vsyncpa [#allocation4], 1 }

</bundles_post_ra>
